<compile_context>
chip_gen: v5e
topology: v5e:2x2
jax: 0.10.0
libtpu: 0.0.40
codegen_flags: <defaults>
</compile_context>

<pallas_src>
import jax
import jax.numpy as jnp
from jax import lax
from jax.experimental import pallas as pl
from jax.experimental.pallas import tpu as pltpu


def _up_conv3d_kernel(x_ref, w_ref, b_ref, o_ref):
    # (8*Cout, Cin) x (Cin, TM) -> (8*Cout, TM), f32 accumulate on the MXU,
    # bias epilogue fused (per-row bias broadcast across the lane axis).
    acc = jnp.dot(w_ref[...], x_ref[...], preferred_element_type=jnp.float32)
    o_ref[...] = (acc + b_ref[...]).astype(o_ref.dtype)


def _choose_voxel_tile(mv, block_m):
    """Per-batch voxel tile: whole axis if it fits; otherwise the largest
    128-multiple divisor of mv <= block_m (no ragged tail); otherwise block_m
    rounded to 128 with a ragged (Pallas-masked) last block."""
    block_m = max(int(block_m), 128)
    if mv <= block_m:
        return mv
    if mv % 128 == 0:
        t = (block_m // 128) * 128
        while t >= 128:
            if mv % t == 0:
                return t
            t -= 128
    return (block_m // 128) * 128


def up_conv_3d(x_ncdhw, w_iodhw, bias, *, block_m=8192):
    """Forward of ConvTranspose3d(ch_in, ch_in//2, kernel_size=2, stride=2).

    x_ncdhw : (N, Cin, D, H, W) float32
    w_iodhw : (Cin, Cout, 2, 2, 2) float32  (PyTorch ConvTranspose3d weight layout)
    bias    : (Cout,) float32
    returns : (N, Cout, 2D, 2H, 2W) float32
    """
    N, Cin, D, H, W = x_ncdhw.shape
    cin_w, Cout, kD, kH, kW = w_iodhw.shape
    assert cin_w == Cin and (kD, kH, kW) == (2, 2, 2)
    KT = kD * kH * kW            # 8 taps (no overlap since stride == kernel)
    KC = KT * Cout               # rows of the fused weight / output slab
    Mv = D * H * W               # per-batch voxel axis -> lane axis

    # Free view (no copy, no transpose): keep N leading, merge spatial dims.
    x3 = x_ncdhw.reshape(N, Cin, Mv)

    # Fused weight, rows ordered (kd, kh, kw, o): w2t[tap*Cout + o, c] = W[c,o,kd,kh,kw]
    w2t = jnp.transpose(w_iodhw, (2, 3, 4, 1, 0)).reshape(KC, Cin)
    # Per-row bias (Cout bias replicated over the 8 taps), broadcast once here.
    b2 = jnp.tile(bias, KT).reshape(KC, 1).astype(jnp.float32)

    TM = _choose_voxel_tile(Mv, block_m)
    n_m = pl.cdiv(Mv, TM)
    # v7x has 2 TensorCores: keep the (parallel) grid at >= 2 steps so both are fed.
    if N * n_m < 2 and TM % 256 == 0:
        TM //= 2
        n_m = pl.cdiv(Mv, TM)

    # VMEM budget from the actual footprint: double-buffered x / out tiles plus
    # the resident fused weight and bias, with 2x headroom.
    vmem_bytes = 2 * (Cin + KC) * TM * 4 + 2 * KC * (Cin + 1) * 4
    vmem_limit = int(min(max(2 * vmem_bytes, 8 * 2**20), 64 * 2**20))

    y = pl.pallas_call(
        _up_conv3d_kernel,
        out_shape=jax.ShapeDtypeStruct((N, KC, Mv), jnp.float32),
        grid=(N, n_m),
        in_specs=[
            # streamed voxel tiles; batch dim squeezed -> kernel sees (Cin, TM)
            pl.BlockSpec((None, Cin, TM), lambda n, i: (n, 0, i)),
            pl.BlockSpec((KC, Cin), lambda n, i: (0, 0)),   # fused weight, resident
            pl.BlockSpec((KC, 1), lambda n, i: (0, 0)),     # bias, resident
        ],
        out_specs=pl.BlockSpec((None, KC, TM), lambda n, i: (n, 0, i)),
        compiler_params=pltpu.CompilerParams(
            dimension_semantics=("parallel", "parallel"),   # megacore sharding on v7x
            vmem_limit_bytes=vmem_limit,
        ),
    )(x3, w2t, b2)

    # Layout plumbing (outside the kernel): scatter the 8 tap groups into the
    # 2x-upsampled NCDHW output:
    #   out[n, o, 2d+kd, 2h+kh, 2w+kw] = y[n, (kd,kh,kw,o), (d,h,w)]
    y = y.reshape(N, kD, kH, kW, Cout, D, H, W)                 # free split view
    y = jnp.transpose(y, (0, 4, 5, 1, 6, 2, 7, 3))              # (N,Cout,D,kd,H,kh,W,kw)
    return y.reshape(N, Cout, kD * D, kH * H, kW * W)


def up_conv_3d_ref(x_ncdhw, w_iodhw, bias):
    """Pure-JAX reference: ConvTranspose3d(k=2, s=2, p=0) as an input-dilated conv."""
    w_flip = w_iodhw[:, :, ::-1, ::-1, ::-1]              # flip spatial taps
    w_oidhw = jnp.transpose(w_flip, (1, 0, 2, 3, 4))      # (Cout, Cin, 2, 2, 2)
    y = lax.conv_general_dilated(
        x_ncdhw, w_oidhw,
        window_strides=(1, 1, 1),
        padding=[(1, 1), (1, 1), (1, 1)],
        lhs_dilation=(2, 2, 2),
        dimension_numbers=("NCDHW", "OIDHW", "NCDHW"))
    return y + bias.reshape(1, -1, 1, 1, 1)


if __name__ == "__main__":
    key = jax.random.PRNGKey(0)
    kx, kw, kb = jax.random.split(key, 3)

    # Small 3D field consistent with up_conv_3d: NCDHW input, ch_in=4 -> ch_out=2.
    N, Cin, D, H, W = 2, 4, 16, 16, 16
    Cout = Cin // 2

    x = jax.random.normal(kx, (N, Cin, D, H, W), jnp.float32)
    # PyTorch ConvTranspose3d weight layout: (in_channels, out_channels, kD, kH, kW)
    w = 0.3 * jax.random.normal(kw, (Cin, Cout, 2, 2, 2), jnp.float32)
    b = 0.1 * jax.random.normal(kb, (Cout,), jnp.float32)

    out = up_conv_3d(x, w, b)
    out = jax.block_until_ready(out)

    ref = up_conv_3d_ref(x, w, b)
    assert out.shape == (N, Cout, 2 * D, 2 * H, 2 * W)
    max_err = float(jnp.max(jnp.abs(out - ref)))
    assert jnp.allclose(out, ref, atol=1e-3, rtol=1e-3), max_err

    print("KERNEL_OK")
</pallas_src>

<mosaic_0001>
module attributes {stable_mosaic.version = 11 : i64} {
  func.func @_up_conv3d_kernel(%arg0: i32, %arg1: i32, %arg2: memref<1x4x4096xf32, #tpu.memory_space<vmem>>, %arg3: memref<16x4xf32, #tpu.memory_space<vmem>>, %arg4: memref<16x1xf32, #tpu.memory_space<vmem>>, %arg5: memref<1x16x4096xf32, #tpu.memory_space<vmem>>) attributes {dimension_semantics = [#tpu.dimension_semantics<parallel>, #tpu.dimension_semantics<parallel>], iteration_bounds = array<i64: 2, 1>, scalar_prefetch = 0 : i64, scratch_operands = 0 : i64, tpu.core_type = #tpu.core_type<tc>, window_params = [{transform_indices = @transform_0, window_bounds = array<i64: 1, 4, 4096>}, {pipeline_mode = #tpu.pipeline_mode<synchronous>, transform_indices = @transform_1, window_bounds = array<i64: 16, 4>}, {pipeline_mode = #tpu.pipeline_mode<synchronous>, transform_indices = @transform_2, window_bounds = array<i64: 16, 1>}, {transform_indices = @transform_3, window_bounds = array<i64: 1, 16, 4096>}]} {
    %c0 = arith.constant 0 : index
    %c0_0 = arith.constant 0 : index
    %0 = vector.load %arg3[%c0, %c0_0] : memref<16x4xf32, #tpu.memory_space<vmem>>, vector<16x4xf32>
    %c0_1 = arith.constant 0 : index
    %c0_2 = arith.constant 0 : index
    %c0_3 = arith.constant 0 : index
    %1 = vector.load %arg2[%c0_1, %c0_2, %c0_3] : memref<1x4x4096xf32, #tpu.memory_space<vmem>>, vector<1x4x4096xf32>
    %2 = vector.shape_cast %1 : vector<1x4x4096xf32> to vector<4x4096xf32>
    %cst = arith.constant dense<0.000000e+00> : vector<16x4096xf32>
    %3 = tpu.matmul %0, %2, %cst {dimension_numbers = #tpu.dot_dimension_numbers<[1], [0], [0], [1], [0, 0, 1, 1], [], []>} : vector<16x4xf32>, vector<4x4096xf32>, vector<16x4096xf32> -> vector<16x4096xf32>
    %c0_4 = arith.constant 0 : index
    %c0_5 = arith.constant 0 : index
    %4 = vector.load %arg4[%c0_4, %c0_5] : memref<16x1xf32, #tpu.memory_space<vmem>>, vector<16x1xf32>
    %5 = vector.broadcast %4 : vector<16x1xf32> to vector<16x4096xf32>
    %6 = arith.addf %3, %5 : vector<16x4096xf32>
    %c0_6 = arith.constant 0 : index
    %c0_7 = arith.constant 0 : index
    %c0_8 = arith.constant 0 : index
    %7 = vector.load %arg5[%c0_6, %c0_7, %c0_8] : memref<1x16x4096xf32, #tpu.memory_space<vmem>>, vector<1x16x4096xf32>
    %8 = vector.shape_cast %7 : vector<1x16x4096xf32> to vector<16x4096xf32>
    %9 = vector.shape_cast %6 : vector<16x4096xf32> to vector<1x16x4096xf32>
    tpu.vector_store %arg5[%c0_6, %c0_7, %c0_8], %9 {strides = array<i32>} : memref<1x16x4096xf32, #tpu.memory_space<vmem>>, vector<1x16x4096xf32>,
    return
  }
  func.func @transform_0(%arg0: i32, %arg1: i32) -> (i32, i32, i32) {
    %c0_i32 = arith.constant 0 : i32
    %c0_i32_0 = arith.constant 0 : i32
    return %arg0, %c0_i32, %arg1 : i32, i32, i32
  }
  func.func @transform_1(%arg0: i32, %arg1: i32) -> (i32, i32) {
    %c0_i32 = arith.constant 0 : i32
    %c0_i32_0 = arith.constant 0 : i32
    %c0_i32_1 = arith.constant 0 : i32
    return %c0_i32, %c0_i32_0 : i32, i32
  }
  func.func @transform_2(%arg0: i32, %arg1: i32) -> (i32, i32) {
    %c0_i32 = arith.constant 0 : i32
    %c0_i32_0 = arith.constant 0 : i32
    %c0_i32_1 = arith.constant 0 : i32
    return %c0_i32, %c0_i32_0 : i32, i32
  }
  func.func @transform_3(%arg0: i32, %arg1: i32) -> (i32, i32, i32) {
    %c0_i32 = arith.constant 0 : i32
    %c0_i32_0 = arith.constant 0 : i32
    return %arg0, %c0_i32, %arg1 : i32, i32, i32
  }
}

</mosaic_0001>

<bundles_post_ra>
// kernel: tpu_custom_call.1
= control target key start
LH: loop header
LB: loop body
LE: loop exit
PB: predicated region body
PF: predicated region fallthrough
CT: control target
= control target key end

     0   :  { %8 = vsyncpa [#allocation3], 0  ;;  %s2049_s0 = inlined_call_operand.hbm [shape: f32[2,4,4096], index: 0, kind: input, shape index: {}]   ;;  %s2050_s1 = inlined_call_operand.vmem [shape: f32[16,4], index: 1, kind: input, shape index: {}]   ;;  %s2051_s2 = inlined_call_operand.vmem [shape: f32[16,1], index: 2, kind: input, shape index: {}]   ;;  %s2052_s3 = inlined_call_operand.hbm [shape: f32[2,16,4096], index: 3, kind: output, shape index: {}]  }
   0x1   :  { %10 = vsyncpa [#allocation3 + $0x1], 0 }
   0x2   :  { %11 = vsyncpa [#allocation4], 0 }
   0x3   :  { %13 = vsyncpa [#allocation4 + $0x1], 0  ;;  %s1599_s12 = smov 0   ;;  %s1601_s13 = smov 0  }
   0x4   :  { %s1603_s14 = smov 0   ;;  %s1605_s15 = smov 0  }
   0x5   :  { %s1607_s16 = smov 0   ;;  %s1609_s17 = smov 0  }
   0x6 LB: > { %s1283_s18 = sadd.s32 4294967295, %s1574_s17   ;;  %s1284_s19 = sadd.s32 4294967294, %s1574_s17   ;;  %s1574_s17 = sphi %s1609_s17, %s19_s17   ;;  %s1570_s16 = sphi %s1607_s16, %s2061_s16   ;;  %s1566_s15 = sphi %s1605_s15, %s2060_s15   ;;  %s1562_s14 = sphi %s1603_s14, %s2059_s14   ;;  %s1558_s13 = sphi %s1601_s13, %s2058_s13   ;;  %s1554_s12 = sphi %s1599_s12, %s2057_s12  }
   0x7   : > { %s31_s20 = sadd.s32 1, %s1570_s16  ;;  %s40_s21 = sadd.s32 1, %s1562_s14 }
   0x8   : > { %p33_p0 = scmp.ge.s32.totalorder %s31_s20, 2  ;;  %p47_p1 = scmp.ne.s32.totalorder %s1562_s14, %s1558_s13 }
   0x9   : > { %p48_p2 = scmp.eq.s32.totalorder %s1574_s17, 0  ;;  %p53_p3 = scmp.ne.s32.totalorder %s1558_s13, %s1554_s12 }
   0xa   : > { %s2063_s20 = smov (%p33_p0, %s31_s20), 0  ;;  %p54_p5 = scmp.eq.s32.totalorder %s1283_s18, 0 }
   0xb   : > { %p1640_p4 = por %p48_p2, %p47_p1  ;;  %s35_s23 = ssub.s32 %s1570_s16, %s2063_s20 }
   0xc   : > { %p121_p6 = scmp.eq.s32.totalorder %s1283_s18, 1  ;;  %p38_p7 = scmp.eq.s32.totalorder %s35_s23, 0 }
   0xd   : > { %p1646_p8 = por %p54_p5, %p53_p3  ;;  %p127_p10 = scmp.eq.s32.totalorder %s1284_s19, 1 }
   0xe   : > { %p1650_p9 = por %p121_p6, %p47_p1  ;;  %p1286_p12 = scmp.ge.s32.totalorder %s1574_s17, 2 }
   0xf   : > { %s1655_s26 = scalar_select %p38_p7, %s1562_s14, %s40_s21  }
  0x10   : > { %p1657_p11 = por %p127_p10, %p53_p3  ;;  %p1408_p13 = scmp.lt.s32.totalorder %s1574_s17, 2 }
  0x11   : > { %s153_s28 = sand.u32 1, %s1562_s14   ;;  %s1394_s30 = sshll.u32 %s1570_s16, 7 }
  0x12   : > { %s1287_s29 = sshll.u32 %s153_s28, 7  ;;  %s164_s6 = scalar_lea.hbm %s2049_s0, %s1394_s30 }
  0x13   : > { %s157_s7 = scalar_lea.vmem [#allocation2], %s1287_s29  ;;  %s166_s9 = sshll.u32 %s164_s6, 4  ;;  %s167_s9 = int_to_ptr.hbm [resolvable:$true] %s166_s9 }
  0x14   : > { %s168_s8 = sshll.u32 %s157_s7, 4  ;;  %p1401_p0 = pnand %p1408_p13, %p1640_p4  ;;  %s169_s8 = int_to_ptr.vmem [resolvable:$true] %s168_s8 }
  0x15   : > { %p1290_p1 = scmp.ge.s32.totalorder %s1574_s17, 1  ;;  %p173_p2 = scmp.lt.s32.totalorder %s1574_s17, 3 }
  0x16   : > { %s154_s10 = scalar_lea.sflag [#allocation3], %s153_s28 }
  0x17   : > { %1403 = dma.hbm_to_vmem [thread:$0]  (!%p1401_p0), %s167_s9, 2048, %s169_s8, %s154_s10  }
  0x18   : > { %p174_p3 = pnand %p1290_p1, %p173_p2 }
  0x19   : > { %s1673_s11 = sand.u32 (!%p174_p3), 1, %s1558_s13  }
  0x1a   : > { %177 = sbr.rel (%p174_p3) target bundleno = 303 (0x12f), region = 32  ;;  %s1291_s18 = sshll.u32 (!%p174_p3), %s1673_s11, 7 }
  0x1b   : > { %s180_s19 = scalar_lea.sflag (!%p174_p3), [#allocation3], %s1673_s11  ;;  %s1677_s21 = scalar_lea.vmem (!%p174_p3), [#allocation2], %s1291_s18 }
  0x1f   : > { %1545 = dma.done.wait (%p1646_p8), %s180_s19, 2048  }
  0x20   : > { %1547 = vsyncadd (%p1646_p8), %s180_s19, 4294965248  ;;  %v1576_v0 = vmov 0   ;;  %v211_v1 = vld [vmem:[%s1677_s21] sm:$0xff]  ;;  %v212_v2 = vld [vmem:[%s1677_s21 + $0x8] sm:$0xff]  ;;  %vm313_vm0 = vcmask 1043456   ;;  %vm306_vm1 = vcmask 31744  }
  0x21   : > { %1461 = vset.pattern.permute.xlu0 %v1576_v0  ;;  %255 = vst [vmem:[#allocation1] ss:$2 sm:$0xff] %v211_v1  ;;  %v214_v3 = vld [vmem:[%s1677_s21 + $0x18] sm:$0xff]  ;;  %v213_v4 = vld [vmem:[%s1677_s21 + $0x10] sm:$0xff]  ;;  %v215_v6 = vld [vmem:[%s1677_s21 + $0x20] sm:$0xff]  ;;  %s1292_s6 = sshll.u32 %s1673_s11, 9 }
  0x22   : > { %257 = vst [vmem:[#allocation1 + $0x10] ss:$2 sm:$0xff] %v212_v2  ;;  %v227_v5 = vld [vmem:[%s2051_s2] sm:$0xff]  ;;  %v216_v7 = vld [vmem:[%s1677_s21 + $0x28] sm:$0xff]  ;;  %v217_v16 = vld [vmem:[%s1677_s21 + $0x30] sm:$0xff]  ;;  %s1880_s7 = scalar_lea.vmem [#allocation5], %s1292_s6 }
  0x23   : > { %261 = vst [vmem:[#allocation1 + $0x30] ss:$2 sm:$0xff] %v214_v3  ;;  %231 = vperm.xlu0 %1461, %v227_v5   ;;  %v1695_v8 = vld [vmem:[%s2050_s1] sm:$0xff]  ;;  %v228_v18 = vld [vmem:[%s2051_s2 + $0x8] sm:$0xff]  ;;  %v220_v22 = vld [vmem:[%s1677_s21 + $0x48] sm:$0xff]  ;;  %s1395_s8 = sshll.u32 %s1566_s15, 9 }
  0x24   : > { %259 = vst [vmem:[#allocation1 + $0x20] ss:$2 sm:$0xff] %v213_v4  ;;  %v218_v12 = vld [vmem:[%s1677_s21 + $0x38] sm:$0xff]  ;;  %v219_v20 = vld [vmem:[%s1677_s21 + $0x40] sm:$0xff]  ;;  %v221_v28 = vld [vmem:[%s1677_s21 + $0x50] sm:$0xff]  ;;  %s1192_s18 = scalar_lea.hbm %s2052_s3, %s1395_s8  ;;  %s1193_s15 = sshll.u32 %s1880_s7, 4  ;;  %s1194_s15 = int_to_ptr.vmem [resolvable:$true] %s1193_s15 }
  0x25   : > { %v1722_v21 = vld [vmem:[%s2050_s1 + $0x8] sm:$0xff]  ;;  %v222_v25 = vld [vmem:[%s1677_s21 + $0x58] sm:$0xff]  ;;  %v224_v34 = vld [vmem:[%s1677_s21 + $0x68] sm:$0xff]  ;;  %s1195_s19 = sshll.u32 %s1192_s18, 4  ;;  %s1512_s29 = scalar_lea.hbm %s2052_s3, 1024  ;;  %s1196_s19 = int_to_ptr.hbm [resolvable:$true] %s1195_s19 }
  0x26   : > { %v223_v35 = vld [vmem:[%s1677_s21 + $0x60] sm:$0xff]  ;;  %v226_v40 = vld [vmem:[%s1677_s21 + $0x78] sm:$0xff]  ;;  %v225_v41 = vld [vmem:[%s1677_s21 + $0x70] sm:$0xff]  ;;  %s1179_s21 = scalar_lea.sflag [#allocation4], %s1673_s11  ;;  %s1506_s22 = sshra.s32 %s1196_s19, 4  ;;  %s1507_s22 = int_to_ptr.hbm [resolvable:$true] %s1506_s22 }
  0x27   : > { %s1508_s23 = scalar_lea.hbm %s1507_s22, 512  ;;  %p1513_p7 = scmp.lt.s32.totalorder %s1507_s22, %s2052_s3 }
  0x28   : > { %v262_v9 = vld.sshfl [vmem:[#allocation1] sm:$0xff pattern:$0x75316420]  ;;  %v263_v10 = vld.sshfl [vmem:[#allocation1 + $0x8] sm:$0xff pattern:$0x75316420]  ;;  %p1509_p4 = scmp.ne.s32.totalorder %s1507_s22, %s1508_s23  ;;  %p1514_p8 = scmp.lt.s32.totalorder %s1512_s29, %s1508_s23 }
  0x29   : > { %1293 = vmatpush.msk.msra.mxu0 %vm313_vm0, %v262_v9  ;;  %270 = vst [vmem:[#allocation1] ss:$2 sm:$0xff] %v215_v6  ;;  %1296 = vmatpush.msk.msra.mxu1 %vm313_vm0, %v263_v10  ;;  %v264_v11 = vld.sshfl [vmem:[#allocation1 + $0x10] sm:$0xff pattern:$0x75316420] }
  0x2a   : > { %1299 = vmatpush.msk.msra.mxu2 %vm313_vm0, %v264_v11  ;;  %v265_v13 = vld.sshfl [vmem:[#allocation1 + $0x18] sm:$0xff pattern:$0x75316420]  ;;  %1294 = vmatmul.msk.f32.vlgmr.msra.gmra.mxu0 %vm306_vm1, %v1695_v8  ;;  %v268_v14 = vld.sshfl [vmem:[#allocation1 + $0x30] sm:$0xff pattern:$0x75316420]  ;;  %p1510_p5 = pnand %p1509_p4, %p1650_p9  ;;  %p1515_p10 = por %p1514_p8, %p1513_p7 }
  0x2b   : > { %271 = vst [vmem:[#allocation1 + $0x10] ss:$2 sm:$0xff] %v216_v7  ;;  %1302 = vmatpush.msk.msra.mxu3 %vm313_vm0, %v265_v13  ;;  %1297 = vmatmul.msk.f32.vlgmr.msra.gmra.mxu1 %vm306_vm1, %v1695_v8  ;;  %v269_v15 = vld.sshfl [vmem:[#allocation1 + $0x38] sm:$0xff pattern:$0x75316420] }
  0x2c   : > { %1300 = vmatmul.msk.f32.vlgmr.msra.gmra.mxu2 %vm306_vm1, %v1695_v8  ;;  %1303 = vmatmul.msk.f32.vlgmr.msra.gmra.mxu3 %vm306_vm1, %v1695_v8  ;;  %273 = vst [vmem:[#allocation1 + $0x30] ss:$2 sm:$0xff] %v218_v12  ;;  %v266_v17 = vld.sshfl [vmem:[#allocation1 + $0x20] sm:$0xff pattern:$0x75316420]  ;;  %p1511_p6 = pneg %p1510_p5 }
  0x2d   : > { %1311 = vmatpush.msk.msrb.mxu2 %vm313_vm0, %v268_v14  ;;  %1314 = vmatpush.msk.msrb.mxu3 %vm313_vm0, %v269_v15  ;;  %v267_v19 = vld.sshfl [vmem:[#allocation1 + $0x28] sm:$0xff pattern:$0x75316420] }
  0x2e   : > { %1305 = vmatpush.msk.msrb.mxu0 %vm313_vm0, %v266_v17  ;;  %272 = vst [vmem:[#allocation1 + $0x20] ss:$2 sm:$0xff] %v217_v16  ;;  %1308 = vmatpush.msk.msrb.mxu1 %vm313_vm0, %v267_v19  ;;  %p1516_p13 = pnand %p1515_p10, %p1511_p6 }
  0x2f   : > { %236 = vperm.xlu0 %1461, %v228_v18  }
  0x30   : > { %v274_v23 = vld.sshfl [vmem:[#allocation1] sm:$0xff pattern:$0x75316420]  ;;  %v275_v24 = vld.sshfl [vmem:[#allocation1 + $0x8] sm:$0xff pattern:$0x75316420] }
  0x31   : > { %1317 = vmatpush.msk.msra.mxu0 %vm313_vm0, %v274_v23  ;;  %282 = vst [vmem:[#allocation1] ss:$2 sm:$0xff] %v219_v20  ;;  %1320 = vmatpush.msk.msra.mxu1 %vm313_vm0, %v275_v24 }
  0x32   : > { %1295 = vmatmul.msk.f32.gmra.mxu0 %vm306_vm1, %v1722_v21  ;;  %v276_v26 = vld.sshfl [vmem:[#allocation1 + $0x10] sm:$0xff pattern:$0x75316420]  ;;  %v277_v27 = vld.sshfl [vmem:[#allocation1 + $0x18] sm:$0xff pattern:$0x75316420] }
  0x33   : > { %1298 = vmatmul.msk.f32.gmra.mxu1 %vm306_vm1, %v1722_v21  ;;  %1323 = vmatpush.msk.msra.mxu2 %vm313_vm0, %v276_v26  ;;  %283 = vst [vmem:[#allocation1 + $0x10] ss:$2 sm:$0xff] %v220_v22  ;;  %v280_v29 = vld.sshfl [vmem:[#allocation1 + $0x30] sm:$0xff pattern:$0x75316420] }
  0x34   : > { %1301 = vmatmul.msk.f32.gmra.mxu2 %vm306_vm1, %v1722_v21  ;;  %1304 = vmatmul.msk.f32.gmra.mxu3 %vm306_vm1, %v1722_v21  ;;  %v281_v30 = vld.sshfl [vmem:[#allocation1 + $0x38] sm:$0xff pattern:$0x75316420] }
  0x35   : > { %1326 = vmatpush.msk.msra.mxu3 %vm313_vm0, %v277_v27  ;;  %285 = vst [vmem:[#allocation1 + $0x30] ss:$2 sm:$0xff] %v222_v25  ;;  %v278_v31 = vld.sshfl [vmem:[#allocation1 + $0x20] sm:$0xff pattern:$0x75316420] }
  0x36   : > { %v279_v32 = vld.sshfl [vmem:[#allocation1 + $0x28] sm:$0xff pattern:$0x75316420] }
  0x37   : > { %284 = vst [vmem:[#allocation1 + $0x20] ss:$2 sm:$0xff] %v221_v28 }
  0x38   : > { %v286_v37 = vld.sshfl [vmem:[#allocation1] sm:$0xff pattern:$0x75316420]  ;;  %v287_v38 = vld.sshfl [vmem:[#allocation1 + $0x8] sm:$0xff pattern:$0x75316420] }
  0x39   : > { %294 = vst [vmem:[#allocation1] ss:$2 sm:$0xff] %v223_v35 }
  0x3a   : > { %1306 = vmatmul.msk.f32.vlgmr.msrb.gmra.mxu0 %vm306_vm1, %v1695_v8  ;;  %v288_v33 = vld.sshfl [vmem:[#allocation1 + $0x10] sm:$0xff pattern:$0x75316420]  ;;  %v289_v36 = vld.sshfl [vmem:[#allocation1 + $0x18] sm:$0xff pattern:$0x75316420] }
  0x3b   : > { %1309 = vmatmul.msk.f32.vlgmr.msrb.gmra.mxu1 %vm306_vm1, %v1695_v8  ;;  %1329 = vmatpush.msk.msrb.mxu0 %vm313_vm0, %v278_v31  ;;  %295 = vst [vmem:[#allocation1 + $0x10] ss:$2 sm:$0xff] %v224_v34 }
  0x3c   : > { %1312 = vmatmul.msk.f32.vlgmr.msrb.gmra.mxu2 %vm306_vm1, %v1695_v8  ;;  %1315 = vmatmul.msk.f32.vlgmr.msrb.gmra.mxu3 %vm306_vm1, %v1695_v8  ;;  %v292_v39 = vld.sshfl [vmem:[#allocation1 + $0x30] sm:$0xff pattern:$0x75316420]  ;;  %v293_v42 = vld.sshfl [vmem:[#allocation1 + $0x38] sm:$0xff pattern:$0x75316420] }
  0x3d   : > { %1335 = vmatpush.msk.msrb.mxu2 %vm313_vm0, %v280_v29  ;;  %1338 = vmatpush.msk.msrb.mxu3 %vm313_vm0, %v281_v30  ;;  %297 = vst [vmem:[#allocation1 + $0x30] ss:$2 sm:$0xff] %v226_v40 }
  0x3e   : > { %1332 = vmatpush.msk.msrb.mxu1 %vm313_vm0, %v279_v32  ;;  %v290_v43 = vld.sshfl [vmem:[#allocation1 + $0x20] sm:$0xff pattern:$0x75316420]  ;;  %v291_v44 = vld.sshfl [vmem:[#allocation1 + $0x28] sm:$0xff pattern:$0x75316420] }
  0x3f   : > { %296 = vst [vmem:[#allocation1 + $0x20] ss:$2 sm:$0xff] %v225_v41 }
  0x40   : > { %v298_v45 = vld.sshfl [vmem:[#allocation1] sm:$0xff pattern:$0x75316420]  ;;  %v299_v48 = vld.sshfl [vmem:[#allocation1 + $0x8] sm:$0xff pattern:$0x75316420] }
  0x42   : > { %1307 = vmatmul.msk.f32.gmra.mxu0 %vm306_vm1, %v1722_v21  ;;  %v300_v46 = vld.sshfl [vmem:[#allocation1 + $0x10] sm:$0xff pattern:$0x75316420]  ;;  %v301_v47 = vld.sshfl [vmem:[#allocation1 + $0x18] sm:$0xff pattern:$0x75316420] }
  0x43   : > { %1310 = vmatmul.msk.f32.gmra.mxu1 %vm306_vm1, %v1722_v21 }
  0x44   : > { %1313 = vmatmul.msk.f32.gmra.mxu2 %vm306_vm1, %v1722_v21  ;;  %1316 = vmatmul.msk.f32.gmra.mxu3 %vm306_vm1, %v1722_v21  ;;  %v304_v50 = vld.sshfl [vmem:[#allocation1 + $0x30] sm:$0xff pattern:$0x75316420]  ;;  %v305_v51 = vld.sshfl [vmem:[#allocation1 + $0x38] sm:$0xff pattern:$0x75316420] }
  0x46   : > { %v302_v49 = vld.sshfl [vmem:[#allocation1 + $0x20] sm:$0xff pattern:$0x75316420]  ;;  %v303_v52 = vld.sshfl [vmem:[#allocation1 + $0x28] sm:$0xff pattern:$0x75316420] }
  0x4a   : > { %1318 = vmatmul.msk.f32.vlgmr.msra.gmra.mxu0 %vm306_vm1, %v1695_v8 }
  0x4b   : > { %1321 = vmatmul.msk.f32.vlgmr.msra.gmra.mxu1 %vm306_vm1, %v1695_v8  ;;  %1341 = vmatpush.msk.msra.mxu0 %vm313_vm0, %v286_v37 }
  0x4c   : > { %1324 = vmatmul.msk.f32.vlgmr.msra.gmra.mxu2 %vm306_vm1, %v1695_v8  ;;  %1327 = vmatmul.msk.f32.vlgmr.msra.gmra.mxu3 %vm306_vm1, %v1695_v8 }
  0x4d   : > { %1347 = vmatpush.msk.msra.mxu2 %vm313_vm0, %v288_v33  ;;  %1350 = vmatpush.msk.msra.mxu3 %vm313_vm0, %v289_v36 }
  0x4e   : > { %1344 = vmatpush.msk.msra.mxu1 %vm313_vm0, %v287_v38 }
  0x52   : > { %1319 = vmatmul.msk.f32.gmra.mxu0 %vm306_vm1, %v1722_v21 }
  0x53   : > { %1322 = vmatmul.msk.f32.gmra.mxu1 %vm306_vm1, %v1722_v21 }
  0x54   : > { %1325 = vmatmul.msk.f32.gmra.mxu2 %vm306_vm1, %v1722_v21  ;;  %1328 = vmatmul.msk.f32.gmra.mxu3 %vm306_vm1, %v1722_v21 }
  0x5a   : > { %1330 = vmatmul.msk.f32.vlgmr.msrb.gmra.mxu0 %vm306_vm1, %v1695_v8 }
  0x5b   : > { %1333 = vmatmul.msk.f32.vlgmr.msrb.gmra.mxu1 %vm306_vm1, %v1695_v8  ;;  %1353 = vmatpush.msk.msrb.mxu0 %vm313_vm0, %v290_v43 }
  0x5c   : > { %1336 = vmatmul.msk.f32.vlgmr.msrb.gmra.mxu2 %vm306_vm1, %v1695_v8  ;;  %1339 = vmatmul.msk.f32.vlgmr.msrb.gmra.mxu3 %vm306_vm1, %v1695_v8 }
  0x5d   : > { %1359 = vmatpush.msk.msrb.mxu2 %vm313_vm0, %v292_v39  ;;  %1362 = vmatpush.msk.msrb.mxu3 %vm313_vm0, %v293_v42 }
  0x5e   : > { %1356 = vmatpush.msk.msrb.mxu1 %vm313_vm0, %v291_v44 }
  0x62   : > { %1331 = vmatmul.msk.f32.gmra.mxu0 %vm306_vm1, %v1722_v21 }
  0x63   : > { %1334 = vmatmul.msk.f32.gmra.mxu1 %vm306_vm1, %v1722_v21 }
  0x64   : > { %1337 = vmatmul.msk.f32.gmra.mxu2 %vm306_vm1, %v1722_v21  ;;  %1340 = vmatmul.msk.f32.gmra.mxu3 %vm306_vm1, %v1722_v21 }
  0x6a   : > { %1342 = vmatmul.msk.f32.vlgmr.msra.gmra.mxu0 %vm306_vm1, %v1695_v8 }
  0x6b   : > { %1345 = vmatmul.msk.f32.vlgmr.msra.gmra.mxu1 %vm306_vm1, %v1695_v8  ;;  %1365 = vmatpush.msk.msra.mxu0 %vm313_vm0, %v298_v45 }
  0x6c   : > { %1348 = vmatmul.msk.f32.vlgmr.msra.gmra.mxu2 %vm306_vm1, %v1695_v8  ;;  %1351 = vmatmul.msk.f32.vlgmr.msra.gmra.mxu3 %vm306_vm1, %v1695_v8 }
  0x6d   : > { %1371 = vmatpush.msk.msra.mxu2 %vm313_vm0, %v300_v46  ;;  %1374 = vmatpush.msk.msra.mxu3 %vm313_vm0, %v301_v47 }
  0x6e   : > { %1368 = vmatpush.msk.msra.mxu1 %vm313_vm0, %v299_v48 }
  0x72   : > { %1343 = vmatmul.msk.f32.gmra.mxu0 %vm306_vm1, %v1722_v21 }
  0x73   : > { %1346 = vmatmul.msk.f32.gmra.mxu1 %vm306_vm1, %v1722_v21 }
  0x74   : > { %1349 = vmatmul.msk.f32.gmra.mxu2 %vm306_vm1, %v1722_v21  ;;  %1352 = vmatmul.msk.f32.gmra.mxu3 %vm306_vm1, %v1722_v21 }
  0x7a   : > { %1354 = vmatmul.msk.f32.vlgmr.msrb.gmra.mxu0 %vm306_vm1, %v1695_v8 }
  0x7b   : > { %1357 = vmatmul.msk.f32.vlgmr.msrb.gmra.mxu1 %vm306_vm1, %v1695_v8  ;;  %1377 = vmatpush.msk.msrb.mxu0 %vm313_vm0, %v302_v49 }
  0x7c   : > { %1360 = vmatmul.msk.f32.vlgmr.msrb.gmra.mxu2 %vm306_vm1, %v1695_v8  ;;  %1363 = vmatmul.msk.f32.vlgmr.msrb.gmra.mxu3 %vm306_vm1, %v1695_v8 }
  0x7d   : > { %1383 = vmatpush.msk.msrb.mxu2 %vm313_vm0, %v304_v50  ;;  %1386 = vmatpush.msk.msrb.mxu3 %vm313_vm0, %v305_v51 }
  0x7e   : > { %1380 = vmatpush.msk.msrb.mxu1 %vm313_vm0, %v303_v52 }
  0x82   : > { %1355 = vmatmul.msk.f32.gmra.mxu0 %vm306_vm1, %v1722_v21 }
  0x83   : > { %1358 = vmatmul.msk.f32.gmra.mxu1 %vm306_vm1, %v1722_v21 }
  0x84   : > { %1361 = vmatmul.msk.f32.gmra.mxu2 %vm306_vm1, %v1722_v21  ;;  %1364 = vmatmul.msk.f32.gmra.mxu3 %vm306_vm1, %v1722_v21 }
  0x8a   : > { %1366 = vmatmul.msk.f32.vlgmr.msra.gmra.mxu0 %vm306_vm1, %v1695_v8 }
  0x8b   : > { %1369 = vmatmul.msk.f32.vlgmr.msra.gmra.mxu1 %vm306_vm1, %v1695_v8 }
  0x8c   : > { %1372 = vmatmul.msk.f32.vlgmr.msra.gmra.mxu2 %vm306_vm1, %v1695_v8  ;;  %1375 = vmatmul.msk.f32.vlgmr.msra.gmra.mxu3 %vm306_vm1, %v1695_v8 }
  0x92   : > { %1367 = vmatmul.msk.f32.gmra.mxu0 %vm306_vm1, %v1722_v21 }
  0x93   : > { %1370 = vmatmul.msk.f32.gmra.mxu1 %vm306_vm1, %v1722_v21 }
  0x94   : > { %1373 = vmatmul.msk.f32.gmra.mxu2 %vm306_vm1, %v1722_v21  ;;  %1376 = vmatmul.msk.f32.gmra.mxu3 %vm306_vm1, %v1722_v21 }
  0x95   : > { %v1876_v53 = vpop.permute.xlu0 %231 }
  0x9a   : > { %1378 = vmatmul.msk.f32.vlgmr.msrb.gmra.mxu0 %vm306_vm1, %v1695_v8 }
  0x9b   : > { %1381 = vmatmul.msk.f32.vlgmr.msrb.gmra.mxu1 %vm306_vm1, %v1695_v8 }
  0x9c   : > { %1384 = vmatmul.msk.f32.vlgmr.msrb.gmra.mxu2 %vm306_vm1, %v1695_v8  ;;  %1387 = vmatmul.msk.f32.vlgmr.msrb.gmra.mxu3 %vm306_vm1, %v1695_v8 }
  0xa1   : > { %v1884_v58 = vpop.permute.xlu0 %236 }
  0xa2   : > { %1379 = vmatmul.msk.f32.gmra.mxu0 %vm306_vm1, %v1722_v21 }
  0xa3   : > { %1382 = vmatmul.msk.f32.gmra.mxu1 %vm306_vm1, %v1722_v21 }
  0xa4   : > { %1385 = vmatmul.msk.f32.gmra.mxu2 %vm306_vm1, %v1722_v21  ;;  %1388 = vmatmul.msk.f32.gmra.mxu3 %vm306_vm1, %v1722_v21 }
  0xa7   : > { %v395_v54 = vpop.f32.mrf.mxu0 }
  0xa8   : > { %v418_v55 = vpop.f32.mrf.mxu1  ;;  %v396_v56 = vadd.f32 %v395_v54, %v1876_v53 }
  0xa9   : > { %v419_v57 = vadd.f32 %v418_v55, %v1876_v53 }
  0xaa   : > { %1114 = vst [vmem:[%s1880_s7] sm:$0xff] %v396_v56 }
  0xab   : > { %1115 = vst [vmem:[%s1880_s7 + $0x8] sm:$0xff] %v419_v57 }
  0xaf   : > { %v441_v59 = vpop.f32.mrf.mxu2  ;;  %v464_v60 = vpop.f32.mrf.mxu3 }
  0xb0   : > { %v442_v61 = vadd.f32 %v441_v59, %v1876_v53  ;;  %v465_v62 = vadd.f32 %v464_v60, %v1876_v53  ;;  %v398_v63 = vpop.f32.mrf.mxu0  ;;  %v421_v0 = vpop.f32.mrf.mxu1 }
  0xb1   : > { %v399_v1 = vadd.f32 %v398_v63, %v1884_v58  ;;  %v422_v2 = vadd.f32 %v421_v0, %v1884_v58 }
  0xb2   : > { %1116 = vst [vmem:[%s1880_s7 + $0x10] sm:$0xff] %v442_v61 }
  0xb3   : > { %1117 = vst [vmem:[%s1880_s7 + $0x18] sm:$0xff] %v465_v62 }
  0xb4   : > { %1146 = vst [vmem:[%s1880_s7 + $0x100] sm:$0xff] %v399_v1 }
  0xb5   : > { %1147 = vst [vmem:[%s1880_s7 + $0x108] sm:$0xff] %v422_v2 }
  0xb7   : > { %v444_v3 = vpop.f32.mrf.mxu2  ;;  %v467_v4 = vpop.f32.mrf.mxu3 }
  0xb8   : > { %v445_v5 = vadd.f32 %v444_v3, %v1884_v58  ;;  %v468_v6 = vadd.f32 %v467_v4, %v1884_v58  ;;  %v487_v7 = vpop.f32.mrf.mxu0  ;;  %v510_v8 = vpop.f32.mrf.mxu1 }
  0xb9   : > { %v488_v9 = vadd.f32 %v487_v7, %v1876_v53  ;;  %v511_v10 = vadd.f32 %v510_v8, %v1876_v53 }
  0xba   : > { %1148 = vst [vmem:[%s1880_s7 + $0x110] sm:$0xff] %v445_v5 }
  0xbb   : > { %1149 = vst [vmem:[%s1880_s7 + $0x118] sm:$0xff] %v468_v6 }
  0xbc   : > { %1118 = vst [vmem:[%s1880_s7 + $0x20] sm:$0xff] %v488_v9 }
  0xbd   : > { %1119 = vst [vmem:[%s1880_s7 + $0x28] sm:$0xff] %v511_v10 }
  0xbf   : > { %v533_v11 = vpop.f32.mrf.mxu2  ;;  %v556_v12 = vpop.f32.mrf.mxu3 }
  0xc0   : > { %v534_v13 = vadd.f32 %v533_v11, %v1876_v53  ;;  %v557_v14 = vadd.f32 %v556_v12, %v1876_v53  ;;  %v490_v15 = vpop.f32.mrf.mxu0  ;;  %v513_v16 = vpop.f32.mrf.mxu1 }
  0xc1   : > { %v491_v17 = vadd.f32 %v490_v15, %v1884_v58  ;;  %v514_v18 = vadd.f32 %v513_v16, %v1884_v58 }
  0xc2   : > { %1120 = vst [vmem:[%s1880_s7 + $0x30] sm:$0xff] %v534_v13 }
  0xc3   : > { %1121 = vst [vmem:[%s1880_s7 + $0x38] sm:$0xff] %v557_v14 }
  0xc4   : > { %1150 = vst [vmem:[%s1880_s7 + $0x120] sm:$0xff] %v491_v17 }
  0xc5   : > { %1151 = vst [vmem:[%s1880_s7 + $0x128] sm:$0xff] %v514_v18 }
  0xc7   : > { %v536_v19 = vpop.f32.mrf.mxu2  ;;  %v559_v20 = vpop.f32.mrf.mxu3 }
  0xc8   : > { %v537_v21 = vadd.f32 %v536_v19, %v1884_v58  ;;  %v560_v22 = vadd.f32 %v559_v20, %v1884_v58  ;;  %v579_v23 = vpop.f32.mrf.mxu0  ;;  %v602_v24 = vpop.f32.mrf.mxu1 }
  0xc9   : > { %v580_v25 = vadd.f32 %v579_v23, %v1876_v53  ;;  %v603_v26 = vadd.f32 %v602_v24, %v1876_v53 }
  0xca   : > { %1152 = vst [vmem:[%s1880_s7 + $0x130] sm:$0xff] %v537_v21 }
  0xcb   : > { %1153 = vst [vmem:[%s1880_s7 + $0x138] sm:$0xff] %v560_v22 }
  0xcc   : > { %1122 = vst [vmem:[%s1880_s7 + $0x40] sm:$0xff] %v580_v25 }
  0xcd   : > { %1123 = vst [vmem:[%s1880_s7 + $0x48] sm:$0xff] %v603_v26 }
  0xcf   : > { %v625_v27 = vpop.f32.mrf.mxu2  ;;  %v648_v28 = vpop.f32.mrf.mxu3 }
  0xd0   : > { %v626_v29 = vadd.f32 %v625_v27, %v1876_v53  ;;  %v649_v30 = vadd.f32 %v648_v28, %v1876_v53  ;;  %v582_v31 = vpop.f32.mrf.mxu0  ;;  %v605_v32 = vpop.f32.mrf.mxu1 }
  0xd1   : > { %v583_v33 = vadd.f32 %v582_v31, %v1884_v58  ;;  %v606_v34 = vadd.f32 %v605_v32, %v1884_v58 }
  0xd2   : > { %1124 = vst [vmem:[%s1880_s7 + $0x50] sm:$0xff] %v626_v29 }
  0xd3   : > { %1125 = vst [vmem:[%s1880_s7 + $0x58] sm:$0xff] %v649_v30 }
  0xd4   : > { %1154 = vst [vmem:[%s1880_s7 + $0x140] sm:$0xff] %v583_v33 }
  0xd5   : > { %1155 = vst [vmem:[%s1880_s7 + $0x148] sm:$0xff] %v606_v34 }
  0xd7   : > { %v628_v35 = vpop.f32.mrf.mxu2  ;;  %v651_v36 = vpop.f32.mrf.mxu3 }
  0xd8   : > { %v629_v37 = vadd.f32 %v628_v35, %v1884_v58  ;;  %v652_v38 = vadd.f32 %v651_v36, %v1884_v58  ;;  %v671_v39 = vpop.f32.mrf.mxu0  ;;  %v694_v40 = vpop.f32.mrf.mxu1 }
  0xd9   : > { %v672_v41 = vadd.f32 %v671_v39, %v1876_v53  ;;  %v695_v42 = vadd.f32 %v694_v40, %v1876_v53 }
  0xda   : > { %1156 = vst [vmem:[%s1880_s7 + $0x150] sm:$0xff] %v629_v37 }
  0xdb   : > { %1157 = vst [vmem:[%s1880_s7 + $0x158] sm:$0xff] %v652_v38 }
  0xdc   : > { %1126 = vst [vmem:[%s1880_s7 + $0x60] sm:$0xff] %v672_v41 }
  0xdd   : > { %1127 = vst [vmem:[%s1880_s7 + $0x68] sm:$0xff] %v695_v42 }
  0xdf   : > { %v717_v43 = vpop.f32.mrf.mxu2  ;;  %v740_v44 = vpop.f32.mrf.mxu3 }
  0xe0   : > { %v718_v45 = vadd.f32 %v717_v43, %v1876_v53  ;;  %v741_v46 = vadd.f32 %v740_v44, %v1876_v53  ;;  %v674_v47 = vpop.f32.mrf.mxu0  ;;  %v697_v48 = vpop.f32.mrf.mxu1 }
  0xe1   : > { %v675_v49 = vadd.f32 %v674_v47, %v1884_v58  ;;  %v698_v50 = vadd.f32 %v697_v48, %v1884_v58 }
  0xe2   : > { %1128 = vst [vmem:[%s1880_s7 + $0x70] sm:$0xff] %v718_v45 }
  0xe3   : > { %1129 = vst [vmem:[%s1880_s7 + $0x78] sm:$0xff] %v741_v46 }
  0xe4   : > { %1158 = vst [vmem:[%s1880_s7 + $0x160] sm:$0xff] %v675_v49 }
  0xe5   : > { %1159 = vst [vmem:[%s1880_s7 + $0x168] sm:$0xff] %v698_v50 }
  0xe7   : > { %v720_v51 = vpop.f32.mrf.mxu2  ;;  %v743_v52 = vpop.f32.mrf.mxu3 }
  0xe8   : > { %v721_v54 = vadd.f32 %v720_v51, %v1884_v58  ;;  %v744_v55 = vadd.f32 %v743_v52, %v1884_v58  ;;  %v763_v56 = vpop.f32.mrf.mxu0  ;;  %v786_v57 = vpop.f32.mrf.mxu1 }
  0xe9   : > { %v764_v59 = vadd.f32 %v763_v56, %v1876_v53  ;;  %v787_v60 = vadd.f32 %v786_v57, %v1876_v53 }
  0xea   : > { %1160 = vst [vmem:[%s1880_s7 + $0x170] sm:$0xff] %v721_v54 }
  0xeb   : > { %1161 = vst [vmem:[%s1880_s7 + $0x178] sm:$0xff] %v744_v55 }
  0xec   : > { %1130 = vst [vmem:[%s1880_s7 + $0x80] sm:$0xff] %v764_v59 }
  0xed   : > { %1131 = vst [vmem:[%s1880_s7 + $0x88] sm:$0xff] %v787_v60 }
  0xef   : > { %v809_v61 = vpop.f32.mrf.mxu2  ;;  %v832_v62 = vpop.f32.mrf.mxu3 }
  0xf0   : > { %v810_v63 = vadd.f32 %v809_v61, %v1876_v53  ;;  %v833_v0 = vadd.f32 %v832_v62, %v1876_v53  ;;  %v766_v1 = vpop.f32.mrf.mxu0  ;;  %v789_v2 = vpop.f32.mrf.mxu1 }
  0xf1   : > { %v767_v3 = vadd.f32 %v766_v1, %v1884_v58  ;;  %v790_v4 = vadd.f32 %v789_v2, %v1884_v58 }
  0xf2   : > { %1132 = vst [vmem:[%s1880_s7 + $0x90] sm:$0xff] %v810_v63 }
  0xf3   : > { %1133 = vst [vmem:[%s1880_s7 + $0x98] sm:$0xff] %v833_v0 }
  0xf4   : > { %1162 = vst [vmem:[%s1880_s7 + $0x180] sm:$0xff] %v767_v3 }
  0xf5   : > { %1163 = vst [vmem:[%s1880_s7 + $0x188] sm:$0xff] %v790_v4 }
  0xf7   : > { %v812_v5 = vpop.f32.mrf.mxu2  ;;  %v835_v6 = vpop.f32.mrf.mxu3 }
  0xf8   : > { %v813_v7 = vadd.f32 %v812_v5, %v1884_v58  ;;  %v836_v8 = vadd.f32 %v835_v6, %v1884_v58  ;;  %v855_v9 = vpop.f32.mrf.mxu0  ;;  %v878_v10 = vpop.f32.mrf.mxu1 }
  0xf9   : > { %v856_v11 = vadd.f32 %v855_v9, %v1876_v53  ;;  %v879_v12 = vadd.f32 %v878_v10, %v1876_v53 }
  0xfa   : > { %1164 = vst [vmem:[%s1880_s7 + $0x190] sm:$0xff] %v813_v7 }
  0xfb   : > { %1165 = vst [vmem:[%s1880_s7 + $0x198] sm:$0xff] %v836_v8 }
  0xfc   : > { %1134 = vst [vmem:[%s1880_s7 + $0xa0] sm:$0xff] %v856_v11 }
  0xfd   : > { %1135 = vst [vmem:[%s1880_s7 + $0xa8] sm:$0xff] %v879_v12 }
  0xff   : > { %v901_v13 = vpop.f32.mrf.mxu2  ;;  %v924_v14 = vpop.f32.mrf.mxu3 }
 0x100   : > { %v902_v15 = vadd.f32 %v901_v13, %v1876_v53  ;;  %v925_v16 = vadd.f32 %v924_v14, %v1876_v53  ;;  %v858_v17 = vpop.f32.mrf.mxu0  ;;  %v881_v18 = vpop.f32.mrf.mxu1 }
 0x101   : > { %v859_v19 = vadd.f32 %v858_v17, %v1884_v58  ;;  %v882_v20 = vadd.f32 %v881_v18, %v1884_v58 }
 0x102   : > { %1136 = vst [vmem:[%s1880_s7 + $0xb0] sm:$0xff] %v902_v15 }
 0x103   : > { %1137 = vst [vmem:[%s1880_s7 + $0xb8] sm:$0xff] %v925_v16 }
 0x104   : > { %1166 = vst [vmem:[%s1880_s7 + $0x1a0] sm:$0xff] %v859_v19 }
 0x105   : > { %1167 = vst [vmem:[%s1880_s7 + $0x1a8] sm:$0xff] %v882_v20 }
 0x107   : > { %v904_v21 = vpop.f32.mrf.mxu2  ;;  %v927_v22 = vpop.f32.mrf.mxu3 }
 0x108   : > { %v905_v23 = vadd.f32 %v904_v21, %v1884_v58  ;;  %v928_v24 = vadd.f32 %v927_v22, %v1884_v58  ;;  %v947_v25 = vpop.f32.mrf.mxu0  ;;  %v970_v26 = vpop.f32.mrf.mxu1 }
 0x109   : > { %v948_v27 = vadd.f32 %v947_v25, %v1876_v53  ;;  %v971_v28 = vadd.f32 %v970_v26, %v1876_v53 }
 0x10a   : > { %1168 = vst [vmem:[%s1880_s7 + $0x1b0] sm:$0xff] %v905_v23 }
 0x10b   : > { %1169 = vst [vmem:[%s1880_s7 + $0x1b8] sm:$0xff] %v928_v24 }
 0x10c   : > { %1138 = vst [vmem:[%s1880_s7 + $0xc0] sm:$0xff] %v948_v27 }
 0x10d   : > { %1139 = vst [vmem:[%s1880_s7 + $0xc8] sm:$0xff] %v971_v28 }
 0x10f   : > { %v993_v29 = vpop.f32.mrf.mxu2  ;;  %v1016_v30 = vpop.f32.mrf.mxu3 }
 0x110   : > { %v994_v31 = vadd.f32 %v993_v29, %v1876_v53  ;;  %v1017_v32 = vadd.f32 %v1016_v30, %v1876_v53  ;;  %v950_v33 = vpop.f32.mrf.mxu0  ;;  %v973_v34 = vpop.f32.mrf.mxu1 }
 0x111   : > { %v951_v35 = vadd.f32 %v950_v33, %v1884_v58  ;;  %v974_v36 = vadd.f32 %v973_v34, %v1884_v58 }
 0x112   : > { %1140 = vst [vmem:[%s1880_s7 + $0xd0] sm:$0xff] %v994_v31 }
 0x113   : > { %1141 = vst [vmem:[%s1880_s7 + $0xd8] sm:$0xff] %v1017_v32 }
 0x114   : > { %1170 = vst [vmem:[%s1880_s7 + $0x1c0] sm:$0xff] %v951_v35 }
 0x115   : > { %1171 = vst [vmem:[%s1880_s7 + $0x1c8] sm:$0xff] %v974_v36 }
 0x117   : > { %v996_v37 = vpop.f32.mrf.mxu2  ;;  %v1019_v38 = vpop.f32.mrf.mxu3 }
 0x118   : > { %v997_v39 = vadd.f32 %v996_v37, %v1884_v58  ;;  %v1020_v40 = vadd.f32 %v1019_v38, %v1884_v58  ;;  %v1039_v41 = vpop.f32.mrf.mxu0  ;;  %v1062_v42 = vpop.f32.mrf.mxu1 }
 0x119   : > { %v1040_v43 = vadd.f32 %v1039_v41, %v1876_v53  ;;  %v1063_v44 = vadd.f32 %v1062_v42, %v1876_v53 }
 0x11a   : > { %1172 = vst [vmem:[%s1880_s7 + $0x1d0] sm:$0xff] %v997_v39 }
 0x11b   : > { %1173 = vst [vmem:[%s1880_s7 + $0x1d8] sm:$0xff] %v1020_v40 }
 0x11c   : > { %1142 = vst [vmem:[%s1880_s7 + $0xe0] sm:$0xff] %v1040_v43 }
 0x11d   : > { %1143 = vst [vmem:[%s1880_s7 + $0xe8] sm:$0xff] %v1063_v44 }
 0x11f   : > { %v1085_v45 = vpop.f32.mrf.mxu2  ;;  %v1108_v46 = vpop.f32.mrf.mxu3 }
 0x120   : > { %v1086_v47 = vadd.f32 %v1085_v45, %v1876_v53  ;;  %v1109_v48 = vadd.f32 %v1108_v46, %v1876_v53  ;;  %v1042_v49 = vpop.f32.mrf.mxu0  ;;  %v1065_v50 = vpop.f32.mrf.mxu1 }
 0x121   : > { %v1043_v51 = vadd.f32 %v1042_v49, %v1884_v58  ;;  %v1066_v52 = vadd.f32 %v1065_v50, %v1884_v58 }
 0x122   : > { %1144 = vst [vmem:[%s1880_s7 + $0xf0] sm:$0xff] %v1086_v47 }
 0x123   : > { %1145 = vst [vmem:[%s1880_s7 + $0xf8] sm:$0xff] %v1109_v48 }
 0x124   : > { %1174 = vst [vmem:[%s1880_s7 + $0x1e0] sm:$0xff] %v1043_v51 }
 0x125   : > { %1175 = vst [vmem:[%s1880_s7 + $0x1e8] sm:$0xff] %v1066_v52 }
 0x127   : > { %v1088_v53 = vpop.f32.mrf.mxu2  ;;  %v1111_v54 = vpop.f32.mrf.mxu3 }
 0x128   : > { %v1089_v55 = vadd.f32 %v1088_v53, %v1884_v58  ;;  %v1112_v56 = vadd.f32 %v1111_v54, %v1884_v58 }
 0x12a   : > { %1176 = vst [vmem:[%s1880_s7 + $0x1f0] sm:$0xff] %v1089_v55 }
 0x12b   : > { %1177 = vst [vmem:[%s1880_s7 + $0x1f8] sm:$0xff] %v1112_v56 }
 0x12c   : > { %1519 = shalt.err (!%p1516_p13)
}
 0x12d   : > { %s1577_s11 = smov 4096   ;;  %s1578_s5 = smov 256  }
 0x12e   : > { %1398 = dma.vmem_to_hbm [thread:$0]  (%p1650_p9), %s1194_s15, 8192, %s1196_s19, %s1179_s21, %s1577_s11, %s1577_s11, %s1578_s5  }
 0x12f PF: > { %s1210_s6 = sand.u32 1, %s1554_s12   ;;  %p1405_p0 = pnand %p1286_p12, %p1657_p11 }
 0x130   : > { %s1211_s7 = scalar_lea.sflag [#allocation4], %s1210_s6 }
 0x131   : > { %p1406_p1 = pneg %p1405_p0 }
 0x133   : > { %1549 = dma.done.wait (%p1406_p1), %s1211_s7, 8192  }
 0x134   : > { %1551 = vsyncadd (%p1406_p1), %s1211_s7, 4294959104  ;;  %s19_s17 = sadd.s32 1, %s1574_s17   ;;  %s2057_s12 = smov %s1558_s13 }
 0x135   : > { %p16_p2 = scmp.ge.s32.totalorder %s19_s17, 4   ;;  %s2058_s13 = smov %s1562_s14 }
 0x136   : > { %s2059_s14 = smov %s1655_s26  ;;  %s2060_s15 = smov %s1570_s16 }
 0x137   : > { %s2061_s16 = smov %s2063_s20  ;;  %18 = sbr.rel (!%p16_p2) target bundleno = 6 (0x6), region = 80 }
 0x13c   :  { %1217 = vsyncpa [#allocation3], 1 }
 0x13d   :  { %1219 = vsyncpa [#allocation3 + $0x1], 1 }
 0x13e   :  { %1220 = vsyncpa [#allocation4], 1 }
 0x13f   :  { %1222 = vsyncpa [#allocation4 + $0x1], 1 }

</bundles_post_ra>
